<compile_context>
chip_gen: v5e
topology: v5e:2x2
jax: 0.10.0
libtpu: 0.0.40
codegen_flags: <defaults>
</compile_context>

<pallas_src>
import jax
import jax.numpy as jnp
from jax.experimental import pallas as pl
from jax.experimental.pallas import tpu as pltpu

HIDDEN = 50        # fixed by the PyTorch module
H_PAD = 128        # hidden dim padded to lane width (128)
C_PAD = 128        # class dim padded to lane width -> lane-dense output stores
NEG_BIG = -1.0e30  # finite "-inf" baked into padded class-bias lanes


def _round_up(n, m):
    return ((n + m - 1) // m) * m


def fcnet_kernel(x_ref, w1_ref, b1_ref, w2_ref, b2_ref, o_ref):
    # fc1: bf16 MXU inputs, f32 accumulate; bias add + ReLU in f32, lane-dense.
    x = x_ref[...]
    if x.dtype != jnp.bfloat16:           # no-op when the producer emits bf16
        x = x.astype(jnp.bfloat16)
    h = jnp.dot(x, w1_ref[...], preferred_element_type=jnp.float32) + b1_ref[...]
    h = jnp.maximum(h, 0.0)                                   # (TILE_B, H_PAD)

    # fc2: padded w2 rows are zero (padded h lanes contribute nothing) and the
    # padded class lanes of b2 carry -1e30, so they self-mask in the softmax —
    # no iota/where needed here.
    logits = (jnp.dot(h.astype(jnp.bfloat16), w2_ref[...],
                      preferred_element_type=jnp.float32)
              + b2_ref[...])                                  # (TILE_B, C_PAD)

    # Numerically stable log_softmax along dim=1 (exp(-1e30 - m) == 0).
    m = jnp.max(logits, axis=1, keepdims=True)
    s = logits - m
    lse = jnp.log(jnp.sum(jnp.exp(s), axis=1, keepdims=True))
    o_ref[...] = (s - lse).astype(o_ref.dtype)                # full 128-lane store


def fcnet_forward(x, w1p, b1p, w2p, b2p, out_dim, *, tile_b=1024,
                  out_dtype=jnp.float32, slice_output=True,
                  vmem_limit_bytes=48 * 1024 * 1024):
    """x: (B, D_in) f32 or bf16. w1p: (D_in, H_PAD) bf16, b1p: (1, H_PAD) f32,
    w2p: (H_PAD, C_PAD) bf16, b2p: (1, C_PAD) f32 (padded lanes = -1e30).
    Returns (B, out_dim) in out_dtype (or the padded (B_pad, C_PAD) slab when
    slice_output=False; its padded lanes hold ~-1e30 and padded rows are junk)."""
    B, d_in = x.shape
    # >= 2 grid steps whenever possible so the "parallel" batch axis shards
    # across both v7x TensorCores; 16-row multiples keep bf16/f32 tiling native.
    TILE_B = max(16, min(tile_b, _round_up(pl.cdiv(B, 2), 16)))
    B_pad = _round_up(B, TILE_B)
    if B_pad != B:
        x = jnp.pad(x, ((0, B_pad - B), (0, 0)))
    grid = (B_pad // TILE_B,)

    x_bytes = x.dtype.itemsize
    out_bytes = jnp.dtype(out_dtype).itemsize
    flops = 2 * B_pad * (d_in * H_PAD + H_PAD * C_PAD)
    bytes_accessed = (B_pad * d_in * x_bytes          # x in (f32 or bf16)
                      + d_in * H_PAD * 2              # w1 (bf16)
                      + H_PAD * C_PAD * 2             # w2 (bf16)
                      + (H_PAD + C_PAD) * 4           # biases (f32)
                      + B_pad * C_PAD * out_bytes)    # output

    out = pl.pallas_call(
        fcnet_kernel,
        out_shape=jax.ShapeDtypeStruct((B_pad, C_PAD), out_dtype),
        grid=grid,
        in_specs=[
            # x: streamed over batch, auto double-buffered.
            pl.BlockSpec((TILE_B, d_in), lambda i: (i, 0)),
            # Grid-invariant weights/biases: whole-array VMEM residents
            # (no per-step re-fetch, no pointless pipelining buffers).
            pl.BlockSpec(memory_space=pltpu.MemorySpace.VMEM),   # w1
            pl.BlockSpec(memory_space=pltpu.MemorySpace.VMEM),   # b1
            pl.BlockSpec(memory_space=pltpu.MemorySpace.VMEM),   # w2
            pl.BlockSpec(memory_space=pltpu.MemorySpace.VMEM),   # b2
        ],
        out_specs=pl.BlockSpec((TILE_B, C_PAD), lambda i: (i, 0)),
        compiler_params=pltpu.CompilerParams(
            dimension_semantics=("parallel",),
            vmem_limit_bytes=vmem_limit_bytes),
        cost_estimate=pl.CostEstimate(
            flops=flops,
            transcendentals=B_pad * C_PAD,
            bytes_accessed=bytes_accessed),
    )(x, w1p, b1p, w2p, b2p)

    if not slice_output:
        return out          # padded (B_pad, C_PAD) slab — document at call site
    return out[:B, :out_dim]


def init_params(key, input_size, output_size):
    """Deterministic init mimicking nn.Linear's uniform(-1/sqrt(fan_in), ...)."""
    k1, k2, k3, k4 = jax.random.split(key, 4)
    lim1 = 1.0 / jnp.sqrt(input_size)
    lim2 = 1.0 / jnp.sqrt(HIDDEN)
    # stored as (in, out): transpose of PyTorch's (out, in)
    w1 = jax.random.uniform(k1, (input_size, HIDDEN), jnp.float32, -lim1, lim1)
    b1 = jax.random.uniform(k2, (HIDDEN,), jnp.float32, -lim1, lim1)
    w2 = jax.random.uniform(k3, (HIDDEN, output_size), jnp.float32, -lim2, lim2)
    b2 = jax.random.uniform(k4, (output_size,), jnp.float32, -lim2, lim2)
    return w1, b1, w2, b2


def pad_params(w1, b1, w2, b2):
    """Zero-pad hidden->H_PAD and classes->C_PAD once; weights to bf16.
    Padded class-bias lanes are set to -1e30 so they self-mask in log_softmax."""
    d_in, h = w1.shape
    _, c = w2.shape
    w1p = jnp.zeros((d_in, H_PAD), jnp.float32).at[:, :h].set(w1).astype(jnp.bfloat16)
    b1p = jnp.zeros((1, H_PAD), jnp.float32).at[0, :h].set(b1)  # pad bias = 0 -> ReLU(0)=0
    w2p = jnp.zeros((H_PAD, C_PAD), jnp.float32).at[:h, :c].set(w2).astype(jnp.bfloat16)
    b2p = jnp.full((1, C_PAD), NEG_BIG, jnp.float32).at[0, :c].set(b2)
    return w1p, b1p, w2p, b2p


def reference_forward(x, w1, b1, w2, b2):
    """Pure-JAX reference matching the kernel's numerics (bf16 MXU inputs, f32 acc).
    Note: bf16 weights mean results differ from an exact f32 PyTorch FCNet by
    more than ~1e-4 for large d_in / weight magnitudes (inference-grade)."""
    h = jnp.dot(x.astype(jnp.bfloat16), w1.astype(jnp.bfloat16),
                preferred_element_type=jnp.float32) + b1
    h = jnp.maximum(h, 0.0)
    logits = jnp.dot(h.astype(jnp.bfloat16), w2.astype(jnp.bfloat16),
                     preferred_element_type=jnp.float32) + b2
    return jax.nn.log_softmax(logits, axis=1)


if __name__ == "__main__":
    key = jax.random.PRNGKey(0)
    batch, input_size, output_size = 8, 32, 10

    k_x, k_p, k_x2 = jax.random.split(key, 3)
    x = jax.random.normal(k_x, (batch, input_size), jnp.float32)
    w1, b1, w2, b2 = init_params(k_p, input_size, output_size)
    w1p, b1p, w2p, b2p = pad_params(w1, b1, w2, b2)

    # Small batch, f32 in / f32 out (PyTorch-fidelity path).
    out = jax.block_until_ready(fcnet_forward(x, w1p, b1p, w2p, b2p, output_size))
    ref = reference_forward(x, w1, b1, w2, b2)
    assert out.shape == (batch, output_size)
    assert jnp.allclose(out, ref, atol=1e-4, rtol=1e-4), "mismatch vs JAX reference (small batch)"

    # Larger batch: >=2 grid steps (both v7x TCs busy), producer-emitted bf16
    # activations in, bf16 log-probs out (halved HBM traffic on both ends).
    x2 = jax.random.normal(k_x2, (300, input_size), jnp.float32)
    out2 = jax.block_until_ready(
        fcnet_forward(x2.astype(jnp.bfloat16), w1p, b1p, w2p, b2p, output_size,
                      out_dtype=jnp.bfloat16))
    ref2 = reference_forward(x2, w1, b1, w2, b2)
    assert out2.shape == (300, output_size)
    assert jnp.allclose(out2.astype(jnp.float32), ref2, atol=5e-2, rtol=5e-2), \
        "mismatch vs JAX reference (gridded, bf16 I/O)"

    print("KERNEL_OK")
</pallas_src>

<mosaic_0001>
module attributes {stable_mosaic.version = 11 : i64} {
  func.func @fcnet_kernel(%arg0: i32, %arg1: memref<16x32xf32, #tpu.memory_space<vmem>>, %arg2: memref<32x128xbf16, #tpu.memory_space<vmem>>, %arg3: memref<1x128xf32, #tpu.memory_space<vmem>>, %arg4: memref<128x128xbf16, #tpu.memory_space<vmem>>, %arg5: memref<1x128xf32, #tpu.memory_space<vmem>>, %arg6: memref<16x128xf32, #tpu.memory_space<vmem>>) attributes {dimension_semantics = [#tpu.dimension_semantics<parallel>], iteration_bounds = array<i64: 1>, scalar_prefetch = 0 : i64, scratch_operands = 0 : i64, tpu.core_type = #tpu.core_type<tc>, window_params = [{transform_indices = @transform_0, window_bounds = array<i64: 16, 32>}, {pipeline_mode = #tpu.pipeline_mode<synchronous>, transform_indices = @transform_1, window_bounds = array<i64: 32, 128>}, {pipeline_mode = #tpu.pipeline_mode<synchronous>, transform_indices = @transform_2, window_bounds = array<i64: 1, 128>}, {pipeline_mode = #tpu.pipeline_mode<synchronous>, transform_indices = @transform_3, window_bounds = array<i64: 128, 128>}, {pipeline_mode = #tpu.pipeline_mode<synchronous>, transform_indices = @transform_4, window_bounds = array<i64: 1, 128>}, {transform_indices = @transform_5, window_bounds = array<i64: 16, 128>}]} {
    %c0 = arith.constant 0 : index
    %c0_0 = arith.constant 0 : index
    %0 = vector.load %arg1[%c0, %c0_0] : memref<16x32xf32, #tpu.memory_space<vmem>>, vector<16x32xf32>
    %1 = arith.truncf %0 : vector<16x32xf32> to vector<16x32xbf16>
    %c0_1 = arith.constant 0 : index
    %c0_2 = arith.constant 0 : index
    %2 = vector.load %arg2[%c0_1, %c0_2] : memref<32x128xbf16, #tpu.memory_space<vmem>>, vector<32x128xbf16>
    %cst = arith.constant dense<0.000000e+00> : vector<16x128xf32>
    %3 = tpu.matmul %1, %2, %cst {dimension_numbers = #tpu.dot_dimension_numbers<[1], [0], [0], [1], [0, 0, 1, 1], [], []>} : vector<16x32xbf16>, vector<32x128xbf16>, vector<16x128xf32> -> vector<16x128xf32>
    %c0_3 = arith.constant 0 : index
    %c0_4 = arith.constant 0 : index
    %4 = vector.load %arg3[%c0_3, %c0_4] : memref<1x128xf32, #tpu.memory_space<vmem>>, vector<1x128xf32>
    %5 = vector.broadcast %4 : vector<1x128xf32> to vector<16x128xf32>
    %6 = arith.addf %3, %5 : vector<16x128xf32>
    %cst_5 = arith.constant 0.000000e+00 : f32
    %7 = vector.broadcast %cst_5 : f32 to vector<16x128xf32>
    %8 = arith.maximumf %6, %7 : vector<16x128xf32>
    %9 = arith.truncf %8 : vector<16x128xf32> to vector<16x128xbf16>
    %c0_6 = arith.constant 0 : index
    %c0_7 = arith.constant 0 : index
    %10 = vector.load %arg4[%c0_6, %c0_7] : memref<128x128xbf16, #tpu.memory_space<vmem>>, vector<128x128xbf16>
    %cst_8 = arith.constant dense<0.000000e+00> : vector<16x128xf32>
    %11 = tpu.matmul %9, %10, %cst_8 {dimension_numbers = #tpu.dot_dimension_numbers<[1], [0], [0], [1], [0, 0, 1, 1], [], []>} : vector<16x128xbf16>, vector<128x128xbf16>, vector<16x128xf32> -> vector<16x128xf32>
    %c0_9 = arith.constant 0 : index
    %c0_10 = arith.constant 0 : index
    %12 = vector.load %arg5[%c0_9, %c0_10] : memref<1x128xf32, #tpu.memory_space<vmem>>, vector<1x128xf32>
    %13 = vector.broadcast %12 : vector<1x128xf32> to vector<16x128xf32>
    %14 = arith.addf %11, %13 : vector<16x128xf32>
    %cst_11 = arith.constant dense<0xFF800000> : vector<16xf32>
    %15 = vector.multi_reduction <maximumf>, %14, %cst_11 [1] : vector<16x128xf32> to vector<16xf32>
    %16 = vector.shape_cast %15 : vector<16xf32> to vector<16x1xf32>
    %17 = vector.broadcast %16 : vector<16x1xf32> to vector<16x128xf32>
    %18 = arith.subf %14, %17 : vector<16x128xf32>
    %19 = math.exp %18 : vector<16x128xf32>
    %cst_12 = arith.constant dense<0.000000e+00> : vector<16xf32>
    %20 = vector.multi_reduction <add>, %19, %cst_12 [1] : vector<16x128xf32> to vector<16xf32>
    %21 = vector.shape_cast %20 : vector<16xf32> to vector<16x1xf32>
    %22 = math.log %21 : vector<16x1xf32>
    %23 = vector.broadcast %22 : vector<16x1xf32> to vector<16x128xf32>
    %24 = arith.subf %18, %23 : vector<16x128xf32>
    %c0_13 = arith.constant 0 : index
    %c0_14 = arith.constant 0 : index
    %25 = vector.load %arg6[%c0_13, %c0_14] : memref<16x128xf32, #tpu.memory_space<vmem>>, vector<16x128xf32>
    tpu.vector_store %arg6[%c0_13, %c0_14], %24 {strides = array<i32>} : memref<16x128xf32, #tpu.memory_space<vmem>>, vector<16x128xf32>,
    return
  }
  func.func @transform_0(%arg0: i32) -> (i32, i32) {
    %c0_i32 = arith.constant 0 : i32
    %c0_i32_0 = arith.constant 0 : i32
    return %arg0, %c0_i32 : i32, i32
  }
  func.func @transform_1(%arg0: i32) -> (i32, i32) {
    %c0_i32 = arith.constant 0 : i32
    %c0_i32_0 = arith.constant 0 : i32
    %c0_i32_1 = arith.constant 0 : i32
    return %c0_i32, %c0_i32_0 : i32, i32
  }
  func.func @transform_2(%arg0: i32) -> (i32, i32) {
    %c0_i32 = arith.constant 0 : i32
    %c0_i32_0 = arith.constant 0 : i32
    %c0_i32_1 = arith.constant 0 : i32
    return %c0_i32, %c0_i32_0 : i32, i32
  }
  func.func @transform_3(%arg0: i32) -> (i32, i32) {
    %c0_i32 = arith.constant 0 : i32
    %c0_i32_0 = arith.constant 0 : i32
    %c0_i32_1 = arith.constant 0 : i32
    return %c0_i32, %c0_i32_0 : i32, i32
  }
  func.func @transform_4(%arg0: i32) -> (i32, i32) {
    %c0_i32 = arith.constant 0 : i32
    %c0_i32_0 = arith.constant 0 : i32
    %c0_i32_1 = arith.constant 0 : i32
    return %c0_i32, %c0_i32_0 : i32, i32
  }
  func.func @transform_5(%arg0: i32) -> (i32, i32) {
    %c0_i32 = arith.constant 0 : i32
    %c0_i32_0 = arith.constant 0 : i32
    return %arg0, %c0_i32 : i32, i32
  }
}

</mosaic_0001>

<bundles_post_ra>
// kernel: tpu_custom_call.1
= control target key start
LH: loop header
LB: loop body
LE: loop exit
PB: predicated region body
PF: predicated region fallthrough
CT: control target
= control target key end

     0   :  { %10 = vsyncpa [#allocation3], 0  ;;  %s470_s0 = inlined_call_operand.hbm [shape: f32[16,32], index: 0, kind: input, shape index: {}]   ;;  %s471_s1 = inlined_call_operand.hbm [shape: bf16[32,128], index: 1, kind: input, shape index: {}]   ;;  %s472_s2 = inlined_call_operand.vmem [shape: f32[1,128], index: 2, kind: input, shape index: {}]   ;;  %s473_s3 = inlined_call_operand.hbm [shape: bf16[128,128], index: 3, kind: input, shape index: {}]   ;;  %s474_s4 = inlined_call_operand.vmem [shape: f32[1,128], index: 4, kind: input, shape index: {}]   ;;  %s475_s5 = inlined_call_operand.hbm [shape: f32[16,128], index: 5, kind: output, shape index: {}]  }
   0x1   :  { %11 = vsyncpa [#allocation6], 0  ;;  %s30_s20 = sshll.u32 %s471_s1, 4  ;;  %s31_s20 = int_to_ptr.hbm [resolvable:$true] %s30_s20 }
   0x2   :  { %12 = vsyncpa [#allocation4], 0  ;;  %s408_s21 = smov [#allocation5]   ;;  %s17_s25 = sshll.u32 %s470_s0, 4  ;;  %s18_s25 = int_to_ptr.hbm [resolvable:$true] %s17_s25 }
   0x3   :  { %s32_s22 = sshll.u32 %s408_s21, 4  ;;  %s409_s26 = smov 64   ;;  %s33_s22 = int_to_ptr.vmem [resolvable:$true] %s32_s22 }
   0x4   :  { %s410_s27 = smov 4   ;;  %s411_s28 = smov [#allocation2]  }
   0x5   :  { %38 = dma.hbm_to_vmem [thread:$0]  %s31_s20, 256, %s33_s22, [#allocation6], %s409_s26, %s409_s26, %s410_s27  }
   0x6   :  { %s19_s29 = sshll.u32 %s411_s28, 4  ;;  %s412_s30 = smov 128   ;;  %s20_s29 = int_to_ptr.vmem [resolvable:$true] %s19_s29 }
   0x7   :  { %s413_s6 = smov 8   ;;  %s45_s8 = sshll.u32 %s473_s3, 4  ;;  %s46_s8 = int_to_ptr.hbm [resolvable:$true] %s45_s8 }
   0x8   :  { %25 = dma.hbm_to_vmem [thread:$0]  %s18_s25, 256, %s20_s29, [#allocation3], %s412_s30, %s412_s30, %s413_s6  }
   0x9   :  { %s414_s9 = smov [#allocation7]  }
   0xa   :  { %s47_s0 = sshll.u32 %s414_s9, 4  ;;  %s48_s0 = int_to_ptr.vmem [resolvable:$true] %s47_s0 }
   0xb   :  { %53 = dma.hbm_to_vmem [thread:$0]  %s46_s8, 1024, %s48_s0, [#allocation6], %s409_s26, %s409_s26, %s410_s27  }
   0xc   :  { %402 = dma.done.wait [#allocation3], 256  }
   0xd   :  { %403 = vsyncadd [#allocation3], 4294967040 }
   0xe   :  { %404 = dma.done.wait [#allocation6], 1280  }
   0xf   :  { %405 = vsyncadd [#allocation6], 4294966016  ;;  %v279_v0 = vld [vmem:[#allocation5 + $0x8] sm:$0xff]  ;;  %v278_v1 = vld [vmem:[#allocation5] sm:$0xff]  ;;  %vm92_vm0 = vcmask 261120   ;;  %s223_s15 = sshll.u32 %s475_s5, 4  ;;  %s224_s15 = int_to_ptr.hbm [resolvable:$true] %s223_s15 }
  0x10   :  { %v287_v2 = vld [vmem:[#allocation7 + $0x38] sm:$0xff]  ;;  %102 = vmatpush.bf16.msra.mxu0 %v279_v0  ;;  %v69_v3 = vld [vmem:[#allocation2] sm:$0xff]  ;;  %v70_v4 = vld [vmem:[#allocation2 + $0x8] sm:$0xff] }
  0x11   :  { %181 = vmatpush.bf16.msra.mxu1 %v287_v2  ;;  %v286_v5 = vld [vmem:[#allocation7 + $0x30] sm:$0xff]  ;;  %v71_v6 = vpack.c.bf16 %v70_v4, %v69_v3  ;;  %v285_v7 = vld [vmem:[#allocation7 + $0x28] sm:$0xff]  ;;  %v284_v8 = vld [vmem:[#allocation7 + $0x20] sm:$0xff] }
  0x12   :  { %v283_v9 = vld [vmem:[#allocation7 + $0x18] sm:$0xff]  ;;  %v282_v10 = vld [vmem:[#allocation7 + $0x10] sm:$0xff]  ;;  %v281_v11 = vld [vmem:[#allocation7 + $0x8] sm:$0xff] }
  0x13   :  { %v280_v12 = vld [vmem:[#allocation7] sm:$0xff] }
  0x14   :  { %103 = vmatpush.bf16.msra.mxu0 %v278_v1  ;;  %v296_v14 = vld [vmem:[%s472_s2] ss:$0 sm:$0xff]  ;;  %s415_s2 = smov [#allocation8]  }
  0x15   :  { %182 = vmatpush.bf16.msra.mxu1 %v286_v5  ;;  %v297_v21 = vld [vmem:[%s474_s4] ss:$0 sm:$0xff]  ;;  %s221_s4 = sshll.u32 %s415_s2, 4  ;;  %s222_s4 = int_to_ptr.vmem [resolvable:$true] %s221_s4 }
  0x17   :  { %245 = vmatmul.msk.bf16.vlgmr.msra.gmra.mxu0 %vm92_vm0, %v71_v6 }
  0x19   :  { %183 = vmatpush.bf16.msra.mxu1 %v285_v7 }
  0x1d   :  { %184 = vmatpush.bf16.msra.mxu1 %v284_v8 }
  0x21   :  { %185 = vmatpush.bf16.msra.mxu1 %v283_v9 }
  0x25   :  { %186 = vmatpush.bf16.msra.mxu1 %v282_v10 }
  0x29   :  { %187 = vmatpush.bf16.msra.mxu1 %v281_v11 }
  0x2d   :  { %188 = vmatpush.bf16.msra.mxu1 %v280_v12 }
  0x94   :  { %v105_v13 = vpop.f32.mrf.mxu0 }
  0x95   :  { %v106_v15 = vadd.f32 %v296_v14, %v105_v13 }
  0x97   :  { %v110_v18 = vmax.f32 %v106_v15, 0.0 }
  0x9c   :  { %v107_v16 = vpop.f32.mrf.mxu0 }
  0x9d   :  { %v108_v17 = vadd.f32 %v296_v14, %v107_v16 }
  0x9f   :  { %v111_v19 = vmax.f32 %v108_v17, 0.0 }
  0xa1   :  { %v112_v20 = vpack.c.bf16 %v111_v19, %v110_v18 }
  0xa3   :  { %189 = vmatmul.bf16.vlgmr.msra.gmra.mxu1 %v112_v20 }
 0x120   :  { %v190_v22 = vpop.f32.mrf.mxu1 }
 0x121   :  { %v191_v23 = vadd.f32 %v297_v21, %v190_v22 }
 0x123   :  { %195 = vmax.xlane.f32.xlu0 %v191_v23 }
 0x128   :  { %v192_v24 = vpop.f32.mrf.mxu1 }
 0x129   :  { %v193_v25 = vadd.f32 %v297_v21, %v192_v24 }
 0x12b   :  { %197 = vmax.xlane.f32.xlu0 %v193_v25 }
 0x196   :  { %v196_v26 = vpop.xlane.xlu0 %195 }
 0x197   :  { %v199_v27 = vsub.f32 %v191_v23, %v196_v26 }
 0x199   :  { %v201_v28 = vmul.f32 1.442695, %v199_v27 }
 0x19b   :  { %298 = vpow2.f32 %v201_v28 }
 0x19e   :  { %v198_v29 = vpop.xlane.xlu0 %197 }
 0x19f   :  { %v200_v30 = vsub.f32 %v193_v25, %v198_v29 }
 0x1a1   :  { %v299_v31 = vpop.eup %298  ;;  %v203_v32 = vmul.f32 1.442695, %v200_v30 }
 0x1a2   :  { %205 = vadd.xlane.f32.xlu1 %v299_v31 }
 0x1a3   :  { %300 = vpow2.f32 %v203_v32 }
 0x1a9   :  { %v301_v33 = vpop.eup %300 }
 0x1aa   :  { %207 = vadd.xlane.f32.xlu1 %v301_v33 }
 0x215   :  { %v206_v34 = vpop.xlane.xlu1 %205 }
 0x216   :  { %302 = vlog2.f32 %v206_v34 }
 0x21c   :  { %v303_v35 = vpop.eup %302 }
 0x21d   :  { %v210_v36 = vmul.f32 0.6931472, %v303_v35  ;;  %v208_v37 = vpop.xlane.xlu1 %207 }
 0x21e   :  { %304 = vlog2.f32 %v208_v37 }
 0x21f   :  { %v213_v38 = vsub.f32 %v199_v27, %v210_v36 }
 0x221   :  { %215 = vst [vmem:[#allocation8] sm:$0xff] %v213_v38 }
 0x224   :  { %v305_v39 = vpop.eup %304 }
 0x225   :  { %v212_v40 = vmul.f32 0.6931472, %v305_v39 }
 0x227   :  { %v214_v41 = vsub.f32 %v200_v30, %v212_v40 }
 0x229   :  { %216 = vst [vmem:[#allocation8 + $0x8] sm:$0xff] %v214_v41 }
 0x22a   :  { %229 = dma.vmem_to_hbm [thread:$0]  %s222_s4, 256, %s224_s15, [#allocation4], %s412_s30, %s412_s30, %s413_s6  }
 0x22b   :  { %406 = dma.done.wait [#allocation4], 256  }
 0x22c   :  { %407 = vsyncadd [#allocation4], 4294967040 }
 0x22d   :  { %234 = vsyncpa [#allocation3], 1 }
 0x22e   :  { %235 = vsyncpa [#allocation6], 1 }
 0x22f   :  { %236 = vsyncpa [#allocation4], 1 }

</bundles_post_ra>
